<compile_context>
chip_gen: v7x
topology: tpu7x:2x2x1
jax: 0.10.0
libtpu: 0.0.40
codegen_flags: <defaults>
</compile_context>

<pallas_src>
import jax
import jax.numpy as jnp
from jax.experimental import pallas as pl
from jax.experimental.pallas import tpu as pltpu


def _round_up(v, m):
    return (v + m - 1) // m * m


def _norm_linear_kernel(scale_ref, x_ref, w_ref, b_ref, o_ref, acc_ref):
    """One (tm, tn) output tile of  ((x - mean) * inv_std) @ W_t + b.

    scale_ref : SMEM (2,) f32  -> [mean, 1/std]   (scalar prefetch)
    x_ref     : VMEM (tm, tk)  input tile
    w_ref     : VMEM (tk, tn)  pre-transposed weight tile
    b_ref     : VMEM (1,  tn)  bias tile
    o_ref     : VMEM (tm, tn)  output tile
    acc_ref   : VMEM (tm, tn)  f32 accumulator scratch (resident across K)
    """
    k = pl.program_id(2)

    @pl.when(k == 0)
    def _():
        acc_ref[...] = jnp.zeros_like(acc_ref)

    mean = scale_ref[0]
    inv_std = scale_ref[1]
    xn = (x_ref[...].astype(jnp.float32) - mean) * inv_std
    acc_ref[...] += jnp.dot(
        xn, w_ref[...].astype(jnp.float32), preferred_element_type=jnp.float32
    )

    @pl.when(k == pl.num_programs(2) - 1)
    def _():
        o_ref[...] = (acc_ref[...] + b_ref[...].astype(jnp.float32)).astype(o_ref.dtype)


@jax.jit
def ann_forward(x, weight, bias):
    """Forward pass of `model`:  (x - x.mean()) / x.std()  ->  fc_out(x).

    x      : [B, H]  activations
    weight : [C, H]  nn.Linear weight (PyTorch layout)
    bias   : [C]     nn.Linear bias
    returns: [B, C]  float32
    """
    B, H = x.shape
    C, H2 = weight.shape
    assert H == H2 and bias.shape == (C,)

    xf = x.astype(jnp.float32)
    mean = jnp.mean(xf)
    # torch.std() default is the unbiased (ddof=1) estimator.
    std = jnp.std(xf, ddof=1)
    scale = jnp.stack([mean, 1.0 / std]).astype(jnp.float32)

    # Transpose the weight once here ([C, H] -> [H, C]); the kernel contracts
    # the last dim of x against the first dim of w_t (MXU-native).
    w_t = weight.astype(jnp.float32).T

    # --- tile sizes: lane-dense (multiples of 128 on the lane axis), and the
    # whole K in one tile when it fits (drops per-K pipeline overhead). -------
    tm = 256 if B >= 256 else _round_up(B, 8)
    tn = 256 if C >= 256 else _round_up(C, 128)
    tk = 512 if H >= 512 else _round_up(H, 128)

    Bp = _round_up(B, tm)
    Cp = _round_up(C, tn)
    Hp = _round_up(H, tk)

    # Zero-pad to tile multiples. Padded weight rows are zero, so padded x
    # columns (which normalize to -mean/std) contribute nothing to the dot.
    x_p = jnp.zeros((Bp, Hp), jnp.float32).at[:B, :H].set(xf)
    w_p = jnp.zeros((Hp, Cp), jnp.float32).at[:H, :C].set(w_t)
    b_p = jnp.zeros((1, Cp), jnp.float32).at[0, :C].set(bias.astype(jnp.float32))

    grid = (Bp // tm, Cp // tn, Hp // tk)

    out = pl.pallas_call(
        _norm_linear_kernel,
        out_shape=jax.ShapeDtypeStruct((Bp, Cp), jnp.float32),
        grid_spec=pltpu.PrefetchScalarGridSpec(
            num_scalar_prefetch=1,  # scale = [mean, 1/std] lands in SMEM
            grid=grid,
            in_specs=[
                pl.BlockSpec((tm, tk), lambda i, j, k, scale: (i, k)),
                pl.BlockSpec((tk, tn), lambda i, j, k, scale: (k, j)),
                pl.BlockSpec((1, tn), lambda i, j, k, scale: (0, j)),
            ],
            out_specs=pl.BlockSpec((tm, tn), lambda i, j, k, scale: (i, j)),
            scratch_shapes=[pltpu.VMEM((tm, tn), jnp.float32)],
        ),
        compiler_params=pltpu.CompilerParams(
            dimension_semantics=("parallel", "parallel", "arbitrary"),
        ),
    )(scale, x_p, w_p, b_p)

    return out[:B, :C]


if __name__ == "__main__":
    # Small shapes consistent with the module's forward: x is [batch, hid_dim].
    hid_dim = 32
    num_class = 16
    batchsize = 8

    key = jax.random.PRNGKey(0)
    kx, kw, kb = jax.random.split(key, 3)
    x = jax.random.normal(kx, (batchsize, hid_dim), jnp.float32)
    w = jax.random.normal(kw, (num_class, hid_dim), jnp.float32) * 0.1
    b = jax.random.normal(kb, (num_class,), jnp.float32) * 0.1

    out = jax.block_until_ready(ann_forward(x, w, b))

    # Pure-JAX reference of model.forward for a correctness gate.
    xn = (x - jnp.mean(x)) / jnp.std(x, ddof=1)
    ref = xn @ w.T + b

    assert out.shape == (batchsize, num_class)
    err = float(jnp.max(jnp.abs(out - ref)))
    assert jnp.allclose(out, ref, rtol=2e-2, atol=2e-2), f"max abs err = {err}"
    print("KERNEL_OK")
</pallas_src>

<mosaic_0001>
module attributes {stable_mosaic.version = 11 : i64} {
  func.func @_norm_linear_kernel(%arg0: i32, %arg1: i32, %arg2: i32, %arg3: memref<2xf32, #tpu.memory_space<smem>>, %arg4: memref<8x128xf32, #tpu.memory_space<vmem>>, %arg5: memref<128x128xf32, #tpu.memory_space<vmem>>, %arg6: memref<1x128xf32, #tpu.memory_space<vmem>>, %arg7: memref<8x128xf32, #tpu.memory_space<vmem>>, %arg8: memref<8x128xf32, #tpu.memory_space<vmem>>) attributes {dimension_semantics = [#tpu.dimension_semantics<parallel>, #tpu.dimension_semantics<parallel>, #tpu.dimension_semantics<arbitrary>], iteration_bounds = array<i64: 1, 1, 1>, scalar_prefetch = 1 : i64, scratch_operands = 1 : i64, tpu.core_type = #tpu.core_type<tc>, window_params = [{transform_indices = @transform_0, window_bounds = array<i64: 8, 128>}, {transform_indices = @transform_1, window_bounds = array<i64: 128, 128>}, {transform_indices = @transform_2, window_bounds = array<i64: 1, 128>}, {transform_indices = @transform_3, window_bounds = array<i64: 8, 128>}]} {
    %c0_i32 = arith.constant 0 : i32
    %0 = arith.cmpi eq, %arg2, %c0_i32 : i32
    %1 = arith.extui %0 : i1 to i32
    %c0_i32_0 = arith.constant 0 : i32
    %2 = arith.cmpi ne, %1, %c0_i32_0 : i32
    scf.if %2 {
      %cst_11 = arith.constant 0.000000e+00 : f32
      %18 = vector.broadcast %cst_11 : f32 to vector<8x128xf32>
      %c0_12 = arith.constant 0 : index
      %c0_13 = arith.constant 0 : index
      %19 = vector.load %arg8[%c0_12, %c0_13] : memref<8x128xf32, #tpu.memory_space<vmem>>, vector<8x128xf32>
      tpu.vector_store %arg8[%c0_12, %c0_13], %18 {strides = array<i32>} : memref<8x128xf32, #tpu.memory_space<vmem>>, vector<8x128xf32>,
    } else {
    }
    %c0 = arith.constant 0 : index
    %3 = memref.load %arg3[%c0] : memref<2xf32, #tpu.memory_space<smem>>
    %c1 = arith.constant 1 : index
    %4 = memref.load %arg3[%c1] : memref<2xf32, #tpu.memory_space<smem>>
    %c0_1 = arith.constant 0 : index
    %c0_2 = arith.constant 0 : index
    %5 = vector.load %arg4[%c0_1, %c0_2] : memref<8x128xf32, #tpu.memory_space<vmem>>, vector<8x128xf32>
    %6 = vector.broadcast %3 : f32 to vector<8x128xf32>
    %7 = arith.subf %5, %6 : vector<8x128xf32>
    %8 = vector.broadcast %4 : f32 to vector<8x128xf32>
    %9 = arith.mulf %7, %8 : vector<8x128xf32>
    %c0_3 = arith.constant 0 : index
    %c0_4 = arith.constant 0 : index
    %10 = vector.load %arg8[%c0_3, %c0_4] : memref<8x128xf32, #tpu.memory_space<vmem>>, vector<8x128xf32>
    %c0_5 = arith.constant 0 : index
    %c0_6 = arith.constant 0 : index
    %11 = vector.load %arg5[%c0_5, %c0_6] : memref<128x128xf32, #tpu.memory_space<vmem>>, vector<128x128xf32>
    %cst = arith.constant dense<0.000000e+00> : vector<8x128xf32>
    %12 = tpu.matmul %9, %11, %cst {dimension_numbers = #tpu.dot_dimension_numbers<[1], [0], [0], [1], [0, 0, 1, 1], [], []>} : vector<8x128xf32>, vector<128x128xf32>, vector<8x128xf32> -> vector<8x128xf32>
    %13 = arith.addf %10, %12 : vector<8x128xf32>
    %c0_7 = arith.constant 0 : index
    %c0_8 = arith.constant 0 : index
    %14 = vector.load %arg8[%c0_7, %c0_8] : memref<8x128xf32, #tpu.memory_space<vmem>>, vector<8x128xf32>
    tpu.vector_store %arg8[%c0_7, %c0_8], %13 {strides = array<i32>} : memref<8x128xf32, #tpu.memory_space<vmem>>, vector<8x128xf32>,
    %c0_i32_9 = arith.constant 0 : i32
    %15 = arith.cmpi eq, %arg2, %c0_i32_9 : i32
    %16 = arith.extui %15 : i1 to i32
    %c0_i32_10 = arith.constant 0 : i32
    %17 = arith.cmpi ne, %16, %c0_i32_10 : i32
    scf.if %17 {
      %c0_11 = arith.constant 0 : index
      %c0_12 = arith.constant 0 : index
      %18 = vector.load %arg8[%c0_11, %c0_12] : memref<8x128xf32, #tpu.memory_space<vmem>>, vector<8x128xf32>
      %c0_13 = arith.constant 0 : index
      %c0_14 = arith.constant 0 : index
      %19 = vector.load %arg6[%c0_13, %c0_14] : memref<1x128xf32, #tpu.memory_space<vmem>>, vector<1x128xf32>
      %20 = vector.broadcast %19 : vector<1x128xf32> to vector<8x128xf32>
      %21 = arith.addf %18, %20 : vector<8x128xf32>
      %c0_15 = arith.constant 0 : index
      %c0_16 = arith.constant 0 : index
      %22 = vector.load %arg7[%c0_15, %c0_16] : memref<8x128xf32, #tpu.memory_space<vmem>>, vector<8x128xf32>
      tpu.vector_store %arg7[%c0_15, %c0_16], %21 {strides = array<i32>} : memref<8x128xf32, #tpu.memory_space<vmem>>, vector<8x128xf32>,
    } else {
    }
    return
  }
  func.func @transform_0(%arg0: i32, %arg1: i32, %arg2: i32, %arg3: memref<2xf32, #tpu.memory_space<smem>>) -> (i32, i32) {
    %c0_i32 = arith.constant 0 : i32
    return %arg0, %arg2 : i32, i32
  }
  func.func @transform_1(%arg0: i32, %arg1: i32, %arg2: i32, %arg3: memref<2xf32, #tpu.memory_space<smem>>) -> (i32, i32) {
    %c0_i32 = arith.constant 0 : i32
    return %arg2, %arg1 : i32, i32
  }
  func.func @transform_2(%arg0: i32, %arg1: i32, %arg2: i32, %arg3: memref<2xf32, #tpu.memory_space<smem>>) -> (i32, i32) {
    %c0_i32 = arith.constant 0 : i32
    %c0_i32_0 = arith.constant 0 : i32
    return %c0_i32, %arg1 : i32, i32
  }
  func.func @transform_3(%arg0: i32, %arg1: i32, %arg2: i32, %arg3: memref<2xf32, #tpu.memory_space<smem>>) -> (i32, i32) {
    %c0_i32 = arith.constant 0 : i32
    return %arg0, %arg1 : i32, i32
  }
}

</mosaic_0001>

<bundles_post_ra>
// kernel: ann_forward.1
= control target key start
LH: loop header
LB: loop body
LE: loop exit
PB: predicated region body
PF: predicated region fallthrough
CT: control target
= control target key end

     0   :  { %s370_s0 = inlined_call_operand.vmem [shape: f32[2], index: 0, kind: input, shape index: {}]   ;;  %s371_s1 = inlined_call_operand.vmem [shape: f32[8,128], index: 1, kind: input, shape index: {}]   ;;  %s372_s2 = inlined_call_operand.vmem [shape: f32[128,128], index: 2, kind: input, shape index: {}]   ;;  %s373_s3 = inlined_call_operand.vmem [shape: f32[1,128], index: 3, kind: input, shape index: {}]   ;;  %s374_s4 = inlined_call_operand.hbm [shape: f32[8,128], index: 4, kind: output, shape index: {}]  }
   0x1   :  { %s9_s17 = sshll.u32 %s370_s0, 4  ;;  %s10_s17 = int_to_ptr.vmem [resolvable:$true] %s9_s17 }
   0x2   :  { %s233_s18 = scalar_lea.vmem %s10_s17, 16  ;;  %p238_p1 = scmp.lt.s32.totalorder %s10_s17, %s10_s17 }
   0x3   :  { %p234_p0 = scmp.ne.s32.totalorder %s10_s17, %s233_s18  ;;  %p239_p2 = scmp.lt.s32.totalorder %s233_s18, %s233_s18 }
   0x5   :  { %p240_p3 = por %p239_p2, %p238_p1 }
   0x7   :  { %p241_p4 = pnand %p240_p3, %p234_p0 }
   0x9   :  { %244 = shalt.err (!%p241_p4)  }
   0xa   :  { %s271_s19 = smov [#allocation4]  }
   0xb   :  { %12 = dma.vmem_to_smem %s10_s17, 16, %s271_s19, [#allocation3] }
   0xc   :  { %267 = dma.done.wait [#allocation3], 16 }
   0xd   :  { %268 = vsyncadd [#allocation3], 4294967280 }
   0xe   :  { %14 = sfence }
   0xf   :  { %v35_v0 = vld [vmem:[%s372_s2] sm:$0xff]  ;;  %v36_v1 = vld [vmem:[%s372_s2 + $0x8] sm:$0xff]  ;;  %v37_v2 = vld [vmem:[%s372_s2 + $0x10] sm:$0xff]  ;;  %v272_v3 = vmov 0.0|0.0   ;;  %vm273_vm0 = vmmov 0   ;;  %v274_v6 = vmov 0.0  }
  0x10   :  { %204 = vmatprep.subr.bf16.mxu0 %v272_v3  ;;  %v205_v4 = vpack.c.bf16 %v36_v1, %v35_v0  ;;  %v38_v5 = vld [vmem:[%s372_s2 + $0x18] sm:$0xff]  ;;  %201 = vmatprep.mubr.msk.f32.mxu0 %vm273_vm0, %v274_v6  ;;  %v39_v8 = vld [vmem:[%s372_s2 + $0x20] sm:$0xff]  ;;  %v40_v9 = vld [vmem:[%s372_s2 + $0x28] sm:$0xff] }
  0x11   :  { %v208_v7 = vpack.c.bf16 %v38_v5, %v37_v2 }
  0x12   :  { %206 = vmatpush3.bf16.msra.mxu0 %v205_v4 }
  0x13   :  { %207 = vmatprep.subr.bf16.mxu0 %v272_v3 }
  0x14   :  { %15 = vsyncpa [#allocation6], 0  ;;  %v211_v10 = vpack.c.bf16 %v40_v9, %v39_v8  ;;  %v41_v11 = vld [vmem:[%s372_s2 + $0x30] sm:$0xff]  ;;  %v42_v12 = vld [vmem:[%s372_s2 + $0x38] sm:$0xff]  ;;  %s27_s13 = sld [smem:[#allocation4]]  ;;  %s150_s18 = sld [smem:[#allocation4 + $0x1]] }
  0x15   :  { %v214_v13 = vpack.c.bf16 %v42_v12, %v41_v11  ;;  %v43_v14 = vld [vmem:[%s372_s2 + $0x40] sm:$0xff]  ;;  %v44_v15 = vld [vmem:[%s372_s2 + $0x48] sm:$0xff]  ;;  %v45_v17 = vld [vmem:[%s372_s2 + $0x50] sm:$0xff]  ;;  %s275_s29 = smov [#allocation5]  }
  0x16   :  { %209 = vmatpush3.bf16.msra.mxu0 %v208_v7  ;;  %v217_v16 = vpack.c.bf16 %v44_v15, %v43_v14  ;;  %v46_v18 = vld [vmem:[%s372_s2 + $0x58] sm:$0xff]  ;;  %v47_v20 = vld [vmem:[%s372_s2 + $0x60] sm:$0xff]  ;;  %v48_v21 = vld [vmem:[%s372_s2 + $0x68] sm:$0xff]  ;;  %s142_s30 = sshll.u32 %s275_s29, 4  ;;  %s143_s30 = int_to_ptr.vmem [resolvable:$true] %s142_s30 }
  0x17   :  { %210 = vmatprep.subr.bf16.mxu0 %v272_v3  ;;  %v220_v19 = vpack.c.bf16 %v46_v18, %v45_v17  ;;  %v223_v22 = vpack.c.bf16 %v48_v21, %v47_v20  ;;  %v29_v23 = vld [vmem:[%s371_s1] sm:$0xff]  ;;  %v49_v25 = vld [vmem:[%s372_s2 + $0x70] sm:$0xff]  ;;  %v50_v26 = vld [vmem:[%s372_s2 + $0x78] sm:$0xff]  ;;  %s245_s2 = scalar_lea.vmem %s143_s30, 128  ;;  %p250_p6 = scmp.lt.s32.totalorder %s143_s30, %s143_s30 }
  0x18   :  { %v226_v28 = vpack.c.bf16 %v50_v26, %v49_v25  ;;  %v151_v31 = vld [vmem:[%s373_s3] ss:$0 sm:$0xff]  ;;  %p246_p5 = scmp.ne.s32.totalorder %s143_s30, %s245_s2  ;;  %p251_p7 = scmp.lt.s32.totalorder %s245_s2, %s245_s2 }
  0x1a   :  { %212 = vmatpush3.bf16.msra.mxu0 %v211_v10  ;;  %v30_v24 = vstv %s27_s13  ;;  %v32_v29 = vstv %s150_s18  ;;  %p252_p8 = por %p251_p7, %p250_p6 }
  0x1b   :  { %213 = vmatprep.subr.bf16.mxu0 %v272_v3  ;;  %v31_v27 = vsub.f32 %v29_v23, %v30_v24 }
  0x1c   :  { %p253_p9 = pnand %p252_p8, %p246_p5 }
  0x1d   :  { %v33_v30 = vmul.f32 %v32_v29, %v31_v27 }
  0x1e   :  { %215 = vmatpush3.bf16.msra.mxu0 %v214_v13 }
  0x1f   :  { %216 = vmatprep.subr.bf16.mxu0 %v272_v3 }
  0x22   :  { %218 = vmatpush3.bf16.msra.mxu0 %v217_v16 }
  0x23   :  { %219 = vmatprep.subr.bf16.mxu0 %v272_v3 }
  0x26   :  { %221 = vmatpush3.bf16.msra.mxu0 %v220_v19 }
  0x27   :  { %222 = vmatprep.subr.bf16.mxu0 %v272_v3 }
  0x2a   :  { %224 = vmatpush3.bf16.msra.mxu0 %v223_v22 }
  0x2b   :  { %225 = vmatprep.subr.bf16.mxu0 %v272_v3 }
  0x2e   :  { %227 = vmatpush3.bf16.msra.mxu0 %v226_v28 }
  0x31   :  { %202 = vmatmul.mubr.f32.vlgmr.msra.gmra.mrb[0].mxu0 %v33_v30 }
 0x104   :  { %v117_v32 = vpop.f32.mrb[0].mxu0 }
 0x105   :  { %v134_v33 = vadd.f32 %v151_v31, %v117_v32  ;;  %v203_v34 = vpop.f32.mrb[1].mxu0 }
 0x107   :  { %135 = vst [vmem:[#allocation5] sm:$0xff] %v134_v33 }
 0x108   :  { %256 = shalt.err (!%p253_p9)
}
 0x109   :  { %s257_s7 = scalar_lea.hbm %s374_s4, 128 }
 0x10a   :  { %p258_p10 = scmp.ne.s32.totalorder %s374_s4, %s257_s7  ;;  %p261_p11 = scmp.lt.u32.totalorder %s257_s7, %s374_s4 }
 0x10c   :  { %p263_p12 = pnand %p261_p11, %p258_p10 }
 0x10e   :  { %266 = shalt.err (!%p263_p12)
}
 0x10f   :  { %145 = dma.vmem_to_hbm [thread:$0]  %s143_s30, 128, %s374_s4, [#allocation6]  }
 0x110   :  { %269 = dma.done.wait [#allocation6], 128  }
 0x111   :  { %270 = vsyncadd [#allocation6], 4294967168 }
 0x112   :  { %149 = vsyncpa [#allocation6], 1 }

</bundles_post_ra>
